<compile_context>
chip_gen: v7x
topology: tpu7x:2x2x1
jax: 0.10.0
libtpu: 0.0.40
codegen_flags: <defaults>
</compile_context>

<pallas_src>
import math
import functools

import jax
import jax.numpy as jnp
from jax.experimental import pallas as pl
from jax.experimental.pallas import tpu as pltpu


# ---------------------------------------------------------------------------
# Kernel
# ---------------------------------------------------------------------------
def _sdpa_kernel(q_ref, k_ref, v_ref, o_ref, attn_ref, m_sc, l_sc, acc_sc,
                 *, combined_scale, attn_is_2d):
    # q_ref: (TB, Sq, Dk)   k_ref/v_ref: (TB, tk, Dk/Dv)
    # o_ref: (TB, Sq, Dv)   attn_ref: (TB, tk) or (TB, 1, tk)
    kv = pl.program_id(1)

    @pl.when(kv == 0)
    def _():
        m_sc[...] = jnp.full(m_sc.shape, -jnp.inf, dtype=m_sc.dtype)
        l_sc[...] = jnp.zeros(l_sc.shape, dtype=l_sc.dtype)
        acc_sc[...] = jnp.zeros(acc_sc.shape, dtype=acc_sc.dtype)

    q = q_ref[...]
    k = k_ref[...]
    v = v_ref[...]

    # scores = (q @ k^T) * (1/sqrt(d_k) [* scale]); contraction over the last dims feeds
    # the MXU without an XLU transpose of k; the compile-time scalar is folded into the
    # f32 scores (matches torch, which divides the f32 score tensor -> no extra rounding
    # on q, and the returned pre-softmax row is exact).
    scores = jnp.einsum("bqd,bkd->bqk", q, k,
                        preferred_element_type=jnp.float32) * combined_scale

    # Pre-softmax last-query-row scores for this kv tile (module's second output).
    # Stored in the input dtype, matching the dtype the torch module returns.
    if attn_is_2d:
        attn_ref[...] = scores[:, -1, :].astype(attn_ref.dtype)
    else:
        attn_ref[...] = scores[:, -1:, :].astype(attn_ref.dtype)

    # Online (flash-style) softmax accumulation along the kv axis, all in f32.
    m_prev = m_sc[...]
    m_new = jnp.maximum(m_prev, jnp.max(scores, axis=-1, keepdims=True))
    alpha = jnp.exp(m_prev - m_new)                       # rescale factor for old partials
    e = jnp.exp(scores - m_new)                           # (TB, Sq, tk) f32
    l_sc[...] = alpha * l_sc[...] + jnp.sum(e, axis=-1, keepdims=True)
    acc_sc[...] = alpha * acc_sc[...] + jnp.einsum(
        "bqk,bkd->bqd", e.astype(v.dtype), v,
        preferred_element_type=jnp.float32)               # (TB, Sq, Dv) f32
    m_sc[...] = m_new

    @pl.when(kv == pl.num_programs(1) - 1)
    def _():
        # Normalize at the output: one exact divide over Sq*Dv elements (vs. a multiply
        # pass over Sq*Sk) -> cheap on the VPU and keeps the output tolerance tight.
        o_ref[...] = (acc_sc[...] / l_sc[...]).astype(o_ref.dtype)


# ---------------------------------------------------------------------------
# Sizing helpers (generation-aware VMEM budgets + tile policy)
# ---------------------------------------------------------------------------
def _chip_kind():
    try:
        return jax.devices()[0].device_kind.lower()
    except Exception:
        return ""


def _vmem_budget():
    """(tile-sizing budget, explicit vmem_limit_bytes) derived from the chip's VMEM."""
    try:
        phys = int(pltpu.get_tpu_info().vmem_capacity_bytes)
    except Exception:
        phys = 64 << 20  # conservative fallback: v7x per-TensorCore VMEM
    budget = min(phys // 2, 96 << 20)          # v5e/v6e -> 64 MiB, v7x -> 32 MiB
    limit = min((phys * 3) // 4, 112 << 20)    # headroom above the budget for compiler temps
    return budget, limit


def _per_head_step_bytes(Sq, tk, Dk, Dv, itemsize):
    """Estimated VMEM bytes per head for one (head-block, kv-tile) grid step."""
    # Double-buffered pipelined IO blocks (q, k, v, out, attn row).
    io = 2 * itemsize * (Sq * Dk + tk * Dk + tk * Dv + Sq * Dv + tk)
    # Persistent f32 scratch accumulators (m, l, acc).
    scratch = 4 * (2 * Sq + Sq * Dv)
    # In-kernel temporaries: scores + e (f32), e cast to the matmul dtype, plus a couple
    # of Sq*Dv f32 intermediates from the rescale/accumulate (previously under-counted).
    tmp = 4 * (2 * Sq * tk + 2 * Sq * Dv) + itemsize * Sq * tk
    return io + scratch + tmp


def _choose_tiles(BH, Sq, Sk, Dk, Dv, itemsize, *, budget_bytes, mxu_tile,
                  min_head_steps, tb_cap=64, kv_tile=None):
    """Pick (TB heads per step, tk kv rows per step)."""
    if kv_tile is not None:
        if Sk % kv_tile or (kv_tile != Sk and kv_tile % 8):
            raise ValueError(f"kv_tile={kv_tile} must divide Sk={Sk} and be sublane-aligned")
        tk = kv_tile
    else:
        # kv-tile candidates: full Sk (always layout-legal) plus MXU-aligned divisors
        # (256-multiples on v6e/v7x, 128 on v5e).
        tk_cands = {Sk}
        t = mxu_tile
        while t < Sk:
            if Sk % t == 0:
                tk_cands.add(t)
            t += mxu_tile
        tk_cands = sorted(tk_cands, reverse=True)

        # Aim to batch at least 8 heads per step (fills sublanes, dense attn stores).
        target_tb = min(8, BH)
        tk = None
        for cand in tk_cands:
            if target_tb * _per_head_step_bytes(Sq, cand, Dk, Dv, itemsize) <= budget_bytes:
                tk = cand
                break
        if tk is None:
            tk = tk_cands[-1]  # smallest legal kv tile; accept a smaller head batch

    per_head = _per_head_step_bytes(Sq, tk, Dk, Dv, itemsize)
    if per_head > budget_bytes:
        raise ValueError(
            f"Single-head SDPA step needs ~{per_head} B of VMEM with kv tile {tk}, "
            f"exceeding the {budget_bytes} B budget; tile Sq or raise the VMEM budget.")

    max_tb = min(tb_cap, budget_bytes // per_head)
    divs = [d for d in range(1, BH + 1) if BH % d == 0 and d <= max_tb]
    # Preference tiers:
    #   1) >= min_head_steps head-blocks (v7x megacore) AND sublane-dense attn store
    #   2) >= min_head_steps head-blocks
    #   3) anything that fits the budget
    tier1 = [d for d in divs if BH // d >= min_head_steps and (d % 8 == 0 or d == BH)]
    tier2 = [d for d in divs if BH // d >= min_head_steps]
    for tier in (tier1, tier2, divs):
        if tier:
            return max(tier), tk
    return 1, tk  # unreachable: divs always contains 1


# ---------------------------------------------------------------------------
# Wrapper
# ---------------------------------------------------------------------------
def scaled_dot_product_attention(q, k, v, scale=None, kv_tile=None):
    """q: (B,H,Sq,Dk), k: (B,H,Sk,Dk), v: (B,H,Sk,Dv) -> (out (B,H,Sq,Dv), attn (B,H,Sk))."""
    B, H, Sq, Dk = q.shape
    _, _, Sk, _ = k.shape
    Dv = v.shape[-1]
    BH = B * H

    qf = q.reshape(BH, Sq, Dk)
    kf = k.reshape(BH, Sk, Dk)
    vf = v.reshape(BH, Sk, Dv)

    itemsize = jnp.dtype(q.dtype).itemsize
    budget, vmem_limit = _vmem_budget()
    kind = _chip_kind()
    # v2-v5 MXUs are 128-wide; v6e/v7x are 2x256x256.
    mxu_tile = 128 if any(g in kind for g in ("v2", "v3", "v4", "v5")) else 256
    # v7x has 2 TensorCores per chip -> keep >= 2 blocks on the "parallel" head axis.
    min_head_steps = 2 if "v7" in kind else 1

    TB, tk = _choose_tiles(BH, Sq, Sk, Dk, Dv, itemsize,
                           budget_bytes=budget, mxu_tile=mxu_tile,
                           min_head_steps=min_head_steps, kv_tile=kv_tile)

    # Dense 2-D attn output (sublane-packed, unmasked stores) when layout-legal.
    attn_is_2d = (TB % 8 == 0 or TB == BH) and (tk % 128 == 0 or tk == Sk)

    # Combined compile-time scalar (matches torch: `if scale:` -> only truthy scale applied).
    combined_scale = 1.0 / math.sqrt(Dk)
    if scale:
        combined_scale = combined_scale * float(scale)

    kernel = functools.partial(_sdpa_kernel, combined_scale=combined_scale,
                               attn_is_2d=attn_is_2d)

    if attn_is_2d:
        attn_shape = jax.ShapeDtypeStruct((BH, Sk), q.dtype)
        attn_spec = pl.BlockSpec((TB, tk), lambda i, j: (i, j))
    else:
        attn_shape = jax.ShapeDtypeStruct((BH, 1, Sk), q.dtype)
        attn_spec = pl.BlockSpec((TB, 1, tk), lambda i, j: (i, 0, j))

    flops = 2 * BH * Sq * Sk * (Dk + Dv)          # QK^T + PV
    transcendentals = BH * Sq * Sk                # exp
    bytes_accessed = itemsize * (qf.size + kf.size + vf.size + BH * Sq * Dv + BH * Sk)

    out_f, attn_f = pl.pallas_call(
        kernel,
        out_shape=(
            jax.ShapeDtypeStruct((BH, Sq, Dv), q.dtype),
            attn_shape,
        ),
        grid_spec=pltpu.PrefetchScalarGridSpec(
            num_scalar_prefetch=0,
            grid=(BH // TB, Sk // tk),
            in_specs=[
                pl.BlockSpec((TB, Sq, Dk), lambda i, j: (i, 0, 0)),
                pl.BlockSpec((TB, tk, Dk), lambda i, j: (i, j, 0)),
                pl.BlockSpec((TB, tk, Dv), lambda i, j: (i, j, 0)),
            ],
            out_specs=[
                pl.BlockSpec((TB, Sq, Dv), lambda i, j: (i, 0, 0)),
                attn_spec,
            ],
            scratch_shapes=[
                pltpu.VMEM((TB, Sq, 1), jnp.float32),   # m (running max)
                pltpu.VMEM((TB, Sq, 1), jnp.float32),   # l (running denom)
                pltpu.VMEM((TB, Sq, Dv), jnp.float32),  # acc (unnormalized output)
            ],
        ),
        compiler_params=pltpu.CompilerParams(
            # Head-block axis is independent (megacore-shardable on v7x); kv axis carries
            # the online-softmax accumulator -> arbitrary.
            dimension_semantics=("parallel", "arbitrary"),
            vmem_limit_bytes=int(vmem_limit),
        ),
        cost_estimate=pl.CostEstimate(
            flops=int(flops),
            transcendentals=int(transcendentals),
            bytes_accessed=int(bytes_accessed),
        ),
    )(qf, kf, vf)

    return out_f.reshape(B, H, Sq, Dv), attn_f.reshape(B, H, Sk)


# ---------------------------------------------------------------------------
# Reference + test
# ---------------------------------------------------------------------------
def _reference(q, k, v, scale=None):
    d_k = q.shape[-1]
    attn = jnp.einsum("bhqd,bhkd->bhqk", q, k) / math.sqrt(d_k)
    if scale:
        attn = attn * scale
    p = jax.nn.softmax(attn, axis=-1)
    out = jnp.einsum("bhqk,bhkd->bhqd", p, v)
    return out, attn[:, :, -1]


if __name__ == "__main__":
    key = jax.random.PRNGKey(0)
    kq, kk, kv = jax.random.split(key, 3)

    # Small shape matching the module's usage.
    B, H, S, D = 2, 4, 8, 32
    q = jax.random.normal(kq, (B, H, S, D), dtype=jnp.float32)
    k = jax.random.normal(kk, (B, H, S, D), dtype=jnp.float32)
    v = jax.random.normal(kv, (B, H, S, D), dtype=jnp.float32)

    out, attn_last = scaled_dot_product_attention(q, k, v)
    jax.block_until_ready((out, attn_last))

    ref_out, ref_attn = _reference(q, k, v)
    assert out.shape == (B, H, S, D)
    assert attn_last.shape == (B, H, S)
    # Exact divide at the output (no approximate reciprocal) -> tight tolerances.
    assert jnp.allclose(out, ref_out, rtol=1e-4, atol=1e-4)
    assert jnp.allclose(attn_last, ref_attn, rtol=1e-5, atol=1e-5)

    # Second check: force kv tiling (2 kv steps) to exercise the online-softmax path.
    kq2, kk2, kv2 = jax.random.split(jax.random.PRNGKey(1), 3)
    B2, H2, Sq2, Sk2, D2 = 1, 2, 128, 256, 64
    q2 = jax.random.normal(kq2, (B2, H2, Sq2, D2), dtype=jnp.float32)
    k2 = jax.random.normal(kk2, (B2, H2, Sk2, D2), dtype=jnp.float32)
    v2 = jax.random.normal(kv2, (B2, H2, Sk2, D2), dtype=jnp.float32)
    out2, attn2 = scaled_dot_product_attention(q2, k2, v2, kv_tile=128)
    jax.block_until_ready((out2, attn2))
    ref_out2, ref_attn2 = _reference(q2, k2, v2)
    assert jnp.allclose(out2, ref_out2, rtol=1e-4, atol=1e-4)
    assert jnp.allclose(attn2, ref_attn2, rtol=1e-4, atol=1e-4)

    print("KERNEL_OK")
</pallas_src>

<mosaic_0001>
module attributes {stable_mosaic.version = 11 : i64} {
  func.func @_sdpa_kernel(%arg0: i32, %arg1: i32, %arg2: memref<8x8x32xf32, #tpu.memory_space<vmem>>, %arg3: memref<8x8x32xf32, #tpu.memory_space<vmem>>, %arg4: memref<8x8x32xf32, #tpu.memory_space<vmem>>, %arg5: memref<8x8x32xf32, #tpu.memory_space<vmem>>, %arg6: memref<8x8xf32, #tpu.memory_space<vmem>>, %arg7: memref<8x8x1xf32, #tpu.memory_space<vmem>>, %arg8: memref<8x8x1xf32, #tpu.memory_space<vmem>>, %arg9: memref<8x8x32xf32, #tpu.memory_space<vmem>>) attributes {dimension_semantics = [#tpu.dimension_semantics<parallel>, #tpu.dimension_semantics<arbitrary>], iteration_bounds = array<i64: 1, 1>, scalar_prefetch = 0 : i64, scratch_operands = 3 : i64, tpu.core_type = #tpu.core_type<tc>, window_params = [{transform_indices = @transform_0, window_bounds = array<i64: 8, 8, 32>}, {transform_indices = @transform_1, window_bounds = array<i64: 8, 8, 32>}, {transform_indices = @transform_2, window_bounds = array<i64: 8, 8, 32>}, {transform_indices = @transform_3, window_bounds = array<i64: 8, 8, 32>}, {transform_indices = @transform_4, window_bounds = array<i64: 8, 8>}]} {
    %c0_i32 = arith.constant 0 : i32
    %0 = arith.cmpi eq, %arg1, %c0_i32 : i32
    %1 = arith.extui %0 : i1 to i32
    %c0_i32_0 = arith.constant 0 : i32
    %2 = arith.cmpi ne, %1, %c0_i32_0 : i32
    scf.if %2 {
      %cst_35 = arith.constant 0xFF800000 : f32
      %37 = vector.broadcast %cst_35 : f32 to vector<8x8x1xf32>
      %c0_36 = arith.constant 0 : index
      %c0_37 = arith.constant 0 : index
      %c0_38 = arith.constant 0 : index
      %38 = vector.load %arg7[%c0_36, %c0_37, %c0_38] : memref<8x8x1xf32, #tpu.memory_space<vmem>>, vector<8x8x1xf32>
      tpu.vector_store %arg7[%c0_36, %c0_37, %c0_38], %37 {strides = array<i32>} : memref<8x8x1xf32, #tpu.memory_space<vmem>>, vector<8x8x1xf32>,
      %cst_39 = arith.constant 0.000000e+00 : f32
      %39 = vector.broadcast %cst_39 : f32 to vector<8x8x1xf32>
      %c0_40 = arith.constant 0 : index
      %c0_41 = arith.constant 0 : index
      %c0_42 = arith.constant 0 : index
      %40 = vector.load %arg8[%c0_40, %c0_41, %c0_42] : memref<8x8x1xf32, #tpu.memory_space<vmem>>, vector<8x8x1xf32>
      tpu.vector_store %arg8[%c0_40, %c0_41, %c0_42], %39 {strides = array<i32>} : memref<8x8x1xf32, #tpu.memory_space<vmem>>, vector<8x8x1xf32>,
      %cst_43 = arith.constant 0.000000e+00 : f32
      %41 = vector.broadcast %cst_43 : f32 to vector<8x8x32xf32>
      %c0_44 = arith.constant 0 : index
      %c0_45 = arith.constant 0 : index
      %c0_46 = arith.constant 0 : index
      %42 = vector.load %arg9[%c0_44, %c0_45, %c0_46] : memref<8x8x32xf32, #tpu.memory_space<vmem>>, vector<8x8x32xf32>
      tpu.vector_store %arg9[%c0_44, %c0_45, %c0_46], %41 {strides = array<i32>} : memref<8x8x32xf32, #tpu.memory_space<vmem>>, vector<8x8x32xf32>,
    } else {
    }
    %c0 = arith.constant 0 : index
    %c0_1 = arith.constant 0 : index
    %c0_2 = arith.constant 0 : index
    %3 = vector.load %arg2[%c0, %c0_1, %c0_2] : memref<8x8x32xf32, #tpu.memory_space<vmem>>, vector<8x8x32xf32>
    %c0_3 = arith.constant 0 : index
    %c0_4 = arith.constant 0 : index
    %c0_5 = arith.constant 0 : index
    %4 = vector.load %arg3[%c0_3, %c0_4, %c0_5] : memref<8x8x32xf32, #tpu.memory_space<vmem>>, vector<8x8x32xf32>
    %c0_6 = arith.constant 0 : index
    %c0_7 = arith.constant 0 : index
    %c0_8 = arith.constant 0 : index
    %5 = vector.load %arg4[%c0_6, %c0_7, %c0_8] : memref<8x8x32xf32, #tpu.memory_space<vmem>>, vector<8x8x32xf32>
    "tpu.trace_start"() <{level = 10 : i32, message = "bqd,bkd->bqk"}> : () -> ()
    %cst = arith.constant dense<0.000000e+00> : vector<8x8x8xf32>
    %6 = tpu.matmul %3, %4, %cst {dimension_numbers = #tpu.dot_dimension_numbers<[2], [2], [1], [1], [0, 0, 0, 1, 1, 1], [0], [0]>} : vector<8x8x32xf32>, vector<8x8x32xf32>, vector<8x8x8xf32> -> vector<8x8x8xf32>
    "tpu.trace_stop"() : () -> ()
    %cst_9 = arith.constant 0.176776692 : f32
    %7 = vector.broadcast %cst_9 : f32 to vector<8x8x8xf32>
    %8 = arith.mulf %6, %7 : vector<8x8x8xf32>
    %9 = vector.extract_strided_slice %8 {offsets = [0, 7, 0], sizes = [8, 1, 8], strides = [1, 1, 1]} : vector<8x8x8xf32> to vector<8x1x8xf32>
    %10 = vector.shape_cast %9 : vector<8x1x8xf32> to vector<8x8xf32>
    %c0_10 = arith.constant 0 : index
    %c0_11 = arith.constant 0 : index
    %11 = vector.load %arg6[%c0_10, %c0_11] : memref<8x8xf32, #tpu.memory_space<vmem>>, vector<8x8xf32>
    tpu.vector_store %arg6[%c0_10, %c0_11], %10 {strides = array<i32>} : memref<8x8xf32, #tpu.memory_space<vmem>>, vector<8x8xf32>,
    %c0_12 = arith.constant 0 : index
    %c0_13 = arith.constant 0 : index
    %c0_14 = arith.constant 0 : index
    %12 = vector.load %arg7[%c0_12, %c0_13, %c0_14] : memref<8x8x1xf32, #tpu.memory_space<vmem>>, vector<8x8x1xf32>
    %cst_15 = arith.constant dense<0xFF800000> : vector<8x8xf32>
    %13 = vector.multi_reduction <maximumf>, %8, %cst_15 [2] : vector<8x8x8xf32> to vector<8x8xf32>
    %14 = vector.shape_cast %13 : vector<8x8xf32> to vector<8x8x1xf32>
    %15 = arith.maximumf %12, %14 : vector<8x8x1xf32>
    %16 = arith.subf %12, %15 : vector<8x8x1xf32>
    %17 = math.exp %16 : vector<8x8x1xf32>
    %18 = vector.broadcast %15 : vector<8x8x1xf32> to vector<8x8x8xf32>
    %19 = arith.subf %8, %18 : vector<8x8x8xf32>
    %20 = math.exp %19 : vector<8x8x8xf32>
    %c0_16 = arith.constant 0 : index
    %c0_17 = arith.constant 0 : index
    %c0_18 = arith.constant 0 : index
    %21 = vector.load %arg8[%c0_16, %c0_17, %c0_18] : memref<8x8x1xf32, #tpu.memory_space<vmem>>, vector<8x8x1xf32>
    %22 = arith.mulf %17, %21 : vector<8x8x1xf32>
    %cst_19 = arith.constant dense<0.000000e+00> : vector<8x8xf32>
    %23 = vector.multi_reduction <add>, %20, %cst_19 [2] : vector<8x8x8xf32> to vector<8x8xf32>
    %24 = vector.shape_cast %23 : vector<8x8xf32> to vector<8x8x1xf32>
    %25 = arith.addf %22, %24 : vector<8x8x1xf32>
    %c0_20 = arith.constant 0 : index
    %c0_21 = arith.constant 0 : index
    %c0_22 = arith.constant 0 : index
    %26 = vector.load %arg8[%c0_20, %c0_21, %c0_22] : memref<8x8x1xf32, #tpu.memory_space<vmem>>, vector<8x8x1xf32>
    tpu.vector_store %arg8[%c0_20, %c0_21, %c0_22], %25 {strides = array<i32>} : memref<8x8x1xf32, #tpu.memory_space<vmem>>, vector<8x8x1xf32>,
    %c0_23 = arith.constant 0 : index
    %c0_24 = arith.constant 0 : index
    %c0_25 = arith.constant 0 : index
    %27 = vector.load %arg9[%c0_23, %c0_24, %c0_25] : memref<8x8x32xf32, #tpu.memory_space<vmem>>, vector<8x8x32xf32>
    %28 = vector.broadcast %17 : vector<8x8x1xf32> to vector<8x8x32xf32>
    %29 = arith.mulf %28, %27 : vector<8x8x32xf32>
    "tpu.trace_start"() <{level = 10 : i32, message = "bqk,bkd->bqd"}> : () -> ()
    %cst_26 = arith.constant dense<0.000000e+00> : vector<8x8x32xf32>
    %30 = tpu.matmul %20, %5, %cst_26 {dimension_numbers = #tpu.dot_dimension_numbers<[2], [1], [1], [2], [0, 0, 0, 1, 1, 2], [0], [0]>} : vector<8x8x8xf32>, vector<8x8x32xf32>, vector<8x8x32xf32> -> vector<8x8x32xf32>
    "tpu.trace_stop"() : () -> ()
    %31 = arith.addf %29, %30 : vector<8x8x32xf32>
    %c0_27 = arith.constant 0 : index
    %c0_28 = arith.constant 0 : index
    %c0_29 = arith.constant 0 : index
    %32 = vector.load %arg9[%c0_27, %c0_28, %c0_29] : memref<8x8x32xf32, #tpu.memory_space<vmem>>, vector<8x8x32xf32>
    tpu.vector_store %arg9[%c0_27, %c0_28, %c0_29], %31 {strides = array<i32>} : memref<8x8x32xf32, #tpu.memory_space<vmem>>, vector<8x8x32xf32>,
    %c0_30 = arith.constant 0 : index
    %c0_31 = arith.constant 0 : index
    %c0_32 = arith.constant 0 : index
    %33 = vector.load %arg7[%c0_30, %c0_31, %c0_32] : memref<8x8x1xf32, #tpu.memory_space<vmem>>, vector<8x8x1xf32>
    tpu.vector_store %arg7[%c0_30, %c0_31, %c0_32], %15 {strides = array<i32>} : memref<8x8x1xf32, #tpu.memory_space<vmem>>, vector<8x8x1xf32>,
    %c0_i32_33 = arith.constant 0 : i32
    %34 = arith.cmpi eq, %arg1, %c0_i32_33 : i32
    %35 = arith.extui %34 : i1 to i32
    %c0_i32_34 = arith.constant 0 : i32
    %36 = arith.cmpi ne, %35, %c0_i32_34 : i32
    scf.if %36 {
      %c0_35 = arith.constant 0 : index
      %c0_36 = arith.constant 0 : index
      %c0_37 = arith.constant 0 : index
      %37 = vector.load %arg9[%c0_35, %c0_36, %c0_37] : memref<8x8x32xf32, #tpu.memory_space<vmem>>, vector<8x8x32xf32>
      %c0_38 = arith.constant 0 : index
      %c0_39 = arith.constant 0 : index
      %c0_40 = arith.constant 0 : index
      %38 = vector.load %arg8[%c0_38, %c0_39, %c0_40] : memref<8x8x1xf32, #tpu.memory_space<vmem>>, vector<8x8x1xf32>
      %39 = vector.broadcast %38 : vector<8x8x1xf32> to vector<8x8x32xf32>
      %40 = arith.divf %37, %39 : vector<8x8x32xf32>
      %c0_41 = arith.constant 0 : index
      %c0_42 = arith.constant 0 : index
      %c0_43 = arith.constant 0 : index
      %41 = vector.load %arg5[%c0_41, %c0_42, %c0_43] : memref<8x8x32xf32, #tpu.memory_space<vmem>>, vector<8x8x32xf32>
      tpu.vector_store %arg5[%c0_41, %c0_42, %c0_43], %40 {strides = array<i32>} : memref<8x8x32xf32, #tpu.memory_space<vmem>>, vector<8x8x32xf32>,
    } else {
    }
    return
  }
  func.func @transform_0(%arg0: i32, %arg1: i32) -> (i32, i32, i32) {
    %c0_i32 = arith.constant 0 : i32
    %c0_i32_0 = arith.constant 0 : i32
    %c0_i32_1 = arith.constant 0 : i32
    return %arg0, %c0_i32, %c0_i32_0 : i32, i32, i32
  }
  func.func @transform_1(%arg0: i32, %arg1: i32) -> (i32, i32, i32) {
    %c0_i32 = arith.constant 0 : i32
    %c0_i32_0 = arith.constant 0 : i32
    return %arg0, %arg1, %c0_i32 : i32, i32, i32
  }
  func.func @transform_2(%arg0: i32, %arg1: i32) -> (i32, i32, i32) {
    %c0_i32 = arith.constant 0 : i32
    %c0_i32_0 = arith.constant 0 : i32
    return %arg0, %arg1, %c0_i32 : i32, i32, i32
  }
  func.func @transform_3(%arg0: i32, %arg1: i32) -> (i32, i32, i32) {
    %c0_i32 = arith.constant 0 : i32
    %c0_i32_0 = arith.constant 0 : i32
    %c0_i32_1 = arith.constant 0 : i32
    return %arg0, %c0_i32, %c0_i32_0 : i32, i32, i32
  }
  func.func @transform_4(%arg0: i32, %arg1: i32) -> (i32, i32) {
    %c0_i32 = arith.constant 0 : i32
    return %arg0, %arg1 : i32, i32
  }
}

</mosaic_0001>

<bundles_post_ra>
// kernel: tpu_custom_call.1
= control target key start
LH: loop header
LB: loop body
LE: loop exit
PB: predicated region body
PF: predicated region fallthrough
CT: control target
= control target key end

     0   :  { %10 = vsyncpa [#allocation6], 0  ;;  %s2455_s0 = inlined_call_operand.hbm [shape: f32[8,8,32], index: 0, kind: input, shape index: {}]   ;;  %s2456_s1 = inlined_call_operand.hbm [shape: f32[8,8,32], index: 1, kind: input, shape index: {}]   ;;  %s2457_s2 = inlined_call_operand.hbm [shape: f32[8,8,32], index: 2, kind: input, shape index: {}]   ;;  %s2458_s3 = inlined_call_operand.hbm [shape: f32[8,8,32], index: 3, kind: output, shape index: {0}]   ;;  %s2459_s4 = inlined_call_operand.hbm [shape: f32[8,8], index: 4, kind: output, shape index: {1}]  }
   0x1   :  { %11 = vsyncpa [#allocation9], 0 }
   0x2   :  { %12 = vsyncpa [#allocation7], 0 }
   0x3   :  { %13 = vsyncpa [#allocation13], 0  ;;  %s2043_s15 = smov [#allocation8]   ;;  %s2044_s17 = smov [#allocation5]  }
   0x4   :  { %s31_s16 = sshll.u32 %s2043_s15, 4  ;;  %s19_s18 = sshll.u32 %s2044_s17, 4  ;;  %s32_s16 = int_to_ptr.vmem [resolvable:$true] %s31_s16  ;;  %s2079_s18 = int_to_ptr.vmem [resolvable:$true] %s19_s18 }
   0x5   :  { %s1925_s21 = scalar_lea.hbm %s2456_s1, 1024 }
   0x6   :  { %p1926_p0 = scmp.ne.s32.totalorder %s2456_s1, %s1925_s21  ;;  %p1929_p1 = scmp.lt.u32.totalorder %s1925_s21, %s2456_s1 }
   0x8   :  { %p1931_p2 = pnand %p1929_p1, %p1926_p0 }
   0xa   :  { %1934 = shalt.err (!%p1931_p2)
}
   0xb   :  { %s1935_s26 = scalar_lea.vmem %s32_s16, 1024  ;;  %p1940_p4 = scmp.lt.s32.totalorder %s32_s16, %s32_s16 }
   0xc   :  { %p1936_p3 = scmp.ne.s32.totalorder %s32_s16, %s1935_s26  ;;  %p1941_p5 = scmp.lt.s32.totalorder %s1935_s26, %s1935_s26 }
   0xe   :  { %p1942_p6 = por %p1941_p5, %p1940_p4 }
  0x10   :  { %p1943_p7 = pnand %p1942_p6, %p1936_p3 }
  0x12   :  { %1946 = shalt.err (!%p1943_p7)
}
  0x13   :  { %s2045_s27 = smov 128   ;;  %s2046_s28 = smov 8  }
  0x14   :  { %37 = dma.hbm_to_vmem [thread:$0]  %s2456_s1, 1024, %s32_s16, [#allocation9], %s2045_s27, %s2045_s27, %s2046_s28  }
  0x15   :  { %s1947_s7 = scalar_lea.hbm %s2455_s0, 1024 }
  0x16   :  { %p1948_p8 = scmp.ne.s32.totalorder %s2455_s0, %s1947_s7  ;;  %p1951_p9 = scmp.lt.u32.totalorder %s1947_s7, %s2455_s0 }
  0x18   :  { %p1953_p10 = pnand %p1951_p9, %p1948_p8 }
  0x1a   :  { %1956 = shalt.err (!%p1953_p10)
}
  0x1b   :  { %s1957_s12 = scalar_lea.vmem %s2079_s18, 1024  ;;  %p1962_p12 = scmp.lt.s32.totalorder %s2079_s18, %s2079_s18 }
  0x1c   :  { %p1958_p11 = scmp.ne.s32.totalorder %s2079_s18, %s1957_s12  ;;  %p1963_p13 = scmp.lt.s32.totalorder %s1957_s12, %s1957_s12 }
  0x1e   :  { %p1964_p0 = por %p1963_p13, %p1962_p12 }
  0x20   :  { %p1965_p1 = pnand %p1964_p0, %p1958_p11 }
  0x22   :  { %1968 = shalt.err (!%p1965_p1)
}
  0x23   :  { %25 = dma.hbm_to_vmem [thread:$0]  %s2455_s0, 1024, %s2079_s18, [#allocation6], %s2045_s27, %s2045_s27, %s2046_s28  }
  0x24   :  { %s2047_s14 = smov [#allocation10]   ;;  %s1969_s19 = scalar_lea.hbm %s2457_s2, 1024 }
  0x25   :  { %s43_s15 = sshll.u32 %s2047_s14, 4  ;;  %p1970_p2 = scmp.ne.s32.totalorder %s2457_s2, %s1969_s19  ;;  %s44_s15 = int_to_ptr.vmem [resolvable:$true] %s43_s15 }
  0x26   :  { %p1973_p3 = scmp.lt.u32.totalorder %s1969_s19, %s2457_s2 }
  0x28   :  { %p1975_p4 = pnand %p1973_p3, %p1970_p2 }
  0x2a   :  { %1978 = shalt.err (!%p1975_p4)
}
  0x2b   :  { %s1979_s24 = scalar_lea.vmem %s44_s15, 1024  ;;  %p1984_p6 = scmp.lt.s32.totalorder %s44_s15, %s44_s15 }
  0x2c   :  { %p1980_p5 = scmp.ne.s32.totalorder %s44_s15, %s1979_s24  ;;  %p1985_p7 = scmp.lt.s32.totalorder %s1979_s24, %s1979_s24 }
  0x2e   :  { %p1986_p8 = por %p1985_p7, %p1984_p6 }
  0x30   :  { %p1987_p9 = pnand %p1986_p8, %p1980_p5 }
  0x32   :  { %1990 = shalt.err (!%p1987_p9)
}
  0x33   :  { %49 = dma.hbm_to_vmem [thread:$0]  %s2457_s2, 1024, %s44_s15, [#allocation9], %s2045_s27, %s2045_s27, %s2046_s28  }
  0x34   :  { %2035 = dma.done.wait [#allocation6], 1024  }
  0x35   :  { %2036 = vsyncadd [#allocation6], 4294966272 }
  0x36   :  { %2037 = dma.done.wait [#allocation9], 2048  }
  0x37   :  { %2038 = vsyncadd [#allocation9], 4294965248  ;;  %vm80_vm0 = vcmask 261120   ;;  %v2048_v0 = vmov 0.0   ;;  %vm2049_vm1 = vmmov 0   ;;  %v97_v1 = vld [vmem:[#allocation8] sm:$0xff] }
  0x38   :  { %1784 = vmatprep.subr.mxu0 %v2048_v0  ;;  %81 = vst.msk [vmem:[#allocation4] sm:$0xff] %vm80_vm0, %v2048_v0  ;;  %82 = vst.msk [vmem:[#allocation4 + $0x8] sm:$0xff] %vm80_vm0, %v2048_v0  ;;  %1789 = vmatprep.subr.mxu1 %v2048_v0  ;;  %v98_v2 = vld [vmem:[#allocation8 + $0x8] sm:$0xff]  ;;  %v89_v3 = vld [vmem:[#allocation5] sm:$0xff]  ;;  %vm63_vm2 = vcmask 7168   ;;  %v2050_v17 = vmov -inf  }
  0x39   :  { %83 = vst.msk [vmem:[#allocation4 + $0x10] sm:$0xff] %vm80_vm0, %v2048_v0  ;;  %84 = vst.msk [vmem:[#allocation4 + $0x18] sm:$0xff] %vm80_vm0, %v2048_v0  ;;  %1786 = vmatprep.mubr.msk.f32.mxu0 %vm2049_vm1, %v2048_v0  ;;  %1791 = vmatprep.mubr.msk.f32.mxu1 %vm2049_vm1, %v2048_v0  ;;  %v90_v4 = vld [vmem:[#allocation5 + $0x8] sm:$0xff]  ;;  %v99_v5 = vld [vmem:[#allocation8 + $0x10] sm:$0xff]  ;;  %vm771_vm3 = vcmask 64512   ;;  %vm759_vm4 = vcmask 64519  }
  0x3a   :  { %85 = vst.msk [vmem:[#allocation4 + $0x20] sm:$0xff] %vm80_vm0, %v2048_v0  ;;  %86 = vst.msk [vmem:[#allocation4 + $0x28] sm:$0xff] %vm80_vm0, %v2048_v0  ;;  %1785 = vmatpush3.xpose.msk.msra.mxu0 %vm80_vm0, %v97_v1  ;;  %1790 = vmatpush3.xpose.msk.msra.mxu1 %vm80_vm0, %v98_v2  ;;  %v100_v6 = vld [vmem:[#allocation8 + $0x18] sm:$0xff]  ;;  %v91_v7 = vld [vmem:[#allocation5 + $0x10] sm:$0xff]  ;;  %vm740_vm5 = vcmask 1041409   ;;  %vm743_vm6 = vcmask 1042434  }
  0x3b   :  { %87 = vst.msk [vmem:[#allocation4 + $0x30] sm:$0xff] %vm80_vm0, %v2048_v0  ;;  %88 = vst.msk [vmem:[#allocation4 + $0x38] sm:$0xff] %vm80_vm0, %v2048_v0  ;;  %1794 = vmatprep.subr.mxu0 %v2048_v0  ;;  %1799 = vmatprep.subr.mxu1 %v2048_v0  ;;  %v92_v8 = vld [vmem:[#allocation5 + $0x18] sm:$0xff]  ;;  %v101_v9 = vld [vmem:[#allocation8 + $0x20] sm:$0xff]  ;;  %vm746_vm7 = vcmask 1043459   ;;  %vm749_vm8 = vcmask 1044484  }
  0x3c   :  { %v102_v10 = vld [vmem:[#allocation8 + $0x28] sm:$0xff]  ;;  %v93_v11 = vld [vmem:[#allocation5 + $0x20] sm:$0xff]  ;;  %v103_v13 = vld [vmem:[#allocation8 + $0x30] sm:$0xff]  ;;  %64 = vst.msk [vmem:[#allocation2] sm:$0xff] %vm63_vm2, %v2050_v17  ;;  %vm752_vm9 = vcmask 1045509   ;;  %vm755_vm10 = vcmask 1046534  }
  0x3d   :  { %1787 = vmatmul.mubr.msk.f32.vlgmr.msra.gmra.mrb[0].mxu0 %vm80_vm0, %v89_v3  ;;  %1792 = vmatmul.mubr.msk.f32.vlgmr.msra.gmra.mrb[0].mxu1 %vm80_vm0, %v90_v4  ;;  %v94_v12 = vld [vmem:[#allocation5 + $0x28] sm:$0xff]  ;;  %v104_v14 = vld [vmem:[#allocation8 + $0x38] sm:$0xff]  ;;  %v95_v15 = vld [vmem:[#allocation5 + $0x30] sm:$0xff]  ;;  %65 = vst.msk [vmem:[#allocation2 + $0x8] sm:$0xff] %vm63_vm2, %v2050_v17  ;;  %vm761_vm11 = vcmask 63488   ;;  %v2051_v63 = vmov 0  }
  0x3e   :  { %1795 = vmatpush3.xpose.msk.msra.mxu0 %vm80_vm0, %v99_v5  ;;  %1800 = vmatpush3.xpose.msk.msra.mxu1 %vm80_vm0, %v100_v6  ;;  %v96_v16 = vld [vmem:[#allocation5 + $0x38] sm:$0xff]  ;;  %66 = vst.msk [vmem:[#allocation2 + $0x10] sm:$0xff] %vm63_vm2, %v2050_v17  ;;  %67 = vst.msk [vmem:[#allocation2 + $0x18] sm:$0xff] %vm63_vm2, %v2050_v17  ;;  %s2052_s2 = smov [#allocation12]  }
  0x3f   :  { %1796 = vmatprep.mubr.msk.f32.mxu0 %vm2049_vm1, %v2048_v0  ;;  %1801 = vmatprep.mubr.msk.f32.mxu1 %vm2049_vm1, %v2048_v0  ;;  %68 = vst.msk [vmem:[#allocation2 + $0x20] sm:$0xff] %vm63_vm2, %v2050_v17  ;;  %69 = vst.msk [vmem:[#allocation2 + $0x28] sm:$0xff] %vm63_vm2, %v2050_v17  ;;  %s1714_s25 = sshll.u32 %s2052_s2, 4  ;;  %s1715_s25 = int_to_ptr.vmem [resolvable:$true] %s1714_s25 }
  0x40   :  { %1804 = vmatprep.subr.mxu0 %v2048_v0  ;;  %1809 = vmatprep.subr.mxu1 %v2048_v0  ;;  %70 = vst.msk [vmem:[#allocation2 + $0x30] sm:$0xff] %vm63_vm2, %v2050_v17  ;;  %71 = vst.msk [vmem:[#allocation2 + $0x38] sm:$0xff] %vm63_vm2, %v2050_v17  ;;  %s1991_s26 = scalar_lea.vmem %s1715_s25, 128  ;;  %p1996_p11 = scmp.lt.s32.totalorder %s1715_s25, %s1715_s25 }
  0x41   :  { %1797 = vmatmul.mubr.msk.f32.vlgmr.msra.gmra.mrb[2].mxu0 %vm80_vm0, %v91_v7  ;;  %1802 = vmatmul.mubr.msk.f32.vlgmr.msra.gmra.mrb[2].mxu1 %vm80_vm0, %v92_v8  ;;  %72 = vst.msk [vmem:[#allocation3] sm:$0xff] %vm63_vm2, %v2048_v0  ;;  %73 = vst.msk [vmem:[#allocation3 + $0x8] sm:$0xff] %vm63_vm2, %v2048_v0  ;;  %p1992_p10 = scmp.ne.s32.totalorder %s1715_s25, %s1991_s26  ;;  %p1997_p12 = scmp.lt.s32.totalorder %s1991_s26, %s1991_s26 }
  0x42   :  { %1805 = vmatpush3.xpose.msk.msra.mxu0 %vm80_vm0, %v101_v9  ;;  %1810 = vmatpush3.xpose.msk.msra.mxu1 %vm80_vm0, %v102_v10  ;;  %74 = vst.msk [vmem:[#allocation3 + $0x10] sm:$0xff] %vm63_vm2, %v2048_v0  ;;  %75 = vst.msk [vmem:[#allocation3 + $0x18] sm:$0xff] %vm63_vm2, %v2048_v0 }
  0x43   :  { %1806 = vmatprep.mubr.msk.f32.mxu0 %vm2049_vm1, %v2048_v0  ;;  %1811 = vmatprep.mubr.msk.f32.mxu1 %vm2049_vm1, %v2048_v0  ;;  %76 = vst.msk [vmem:[#allocation3 + $0x20] sm:$0xff] %vm63_vm2, %v2048_v0  ;;  %77 = vst.msk [vmem:[#allocation3 + $0x28] sm:$0xff] %vm63_vm2, %v2048_v0  ;;  %v2258_v1 = vld [vmem:[#allocation2] sm:$0xff]  ;;  %p1998_p13 = por %p1997_p12, %p1996_p11 }
  0x44   :  { %1814 = vmatprep.subr.mxu0 %v2048_v0  ;;  %1819 = vmatprep.subr.mxu1 %v2048_v0  ;;  %78 = vst.msk [vmem:[#allocation3 + $0x30] sm:$0xff] %vm63_vm2, %v2048_v0  ;;  %79 = vst.msk [vmem:[#allocation3 + $0x38] sm:$0xff] %vm63_vm2, %v2048_v0  ;;  %v2263_v4 = vld [vmem:[#allocation2 + $0x8] sm:$0xff] }
  0x45   :  { %1807 = vmatmul.mubr.msk.f32.vlgmr.msra.gmra.mrb[4].mxu0 %vm80_vm0, %v93_v11  ;;  %1812 = vmatmul.mubr.msk.f32.vlgmr.msra.gmra.mrb[4].mxu1 %vm80_vm0, %v94_v12  ;;  %v2265_v5 = vld [vmem:[#allocation2 + $0x10] sm:$0xff]  ;;  %v2278_v11 = vld [vmem:[#allocation2 + $0x18] sm:$0xff]  ;;  %p1999_p0 = pnand %p1998_p13, %p1992_p10 }
  0x46   :  { %1815 = vmatpush3.xpose.msk.msra.mxu0 %vm80_vm0, %v103_v13  ;;  %1820 = vmatpush3.xpose.msk.msra.mxu1 %vm80_vm0, %v104_v14  ;;  %v2280_v12 = vld [vmem:[#allocation2 + $0x20] sm:$0xff] }
  0x47   :  { %1816 = vmatprep.mubr.msk.f32.mxu0 %vm2049_vm1, %v2048_v0  ;;  %1821 = vmatprep.mubr.msk.f32.mxu1 %vm2049_vm1, %v2048_v0 }
  0x48   :  { %1824 = vmatprep.subr.mxu0 %v2048_v0  ;;  %1829 = vmatprep.subr.mxu1 %v2048_v0 }
  0x49   :  { %1817 = vmatmul.mubr.msk.f32.vlgmr.msra.gmra.mrb[6].mxu0 %vm80_vm0, %v95_v15  ;;  %1822 = vmatmul.mubr.msk.f32.vlgmr.msra.gmra.mrb[6].mxu1 %vm80_vm0, %v96_v16 }
  0x4a   :  { %1826 = vmatprep.mubr.msk.f32.mxu0 %vm2049_vm1, %v2048_v0  ;;  %1831 = vmatprep.mubr.msk.f32.mxu1 %vm2049_vm1, %v2048_v0 }
  0x4b   :  { %1875 = vset.pattern.permute.xlu0 %v2051_v63  ;;  %1876 = vset.pattern.permute.xlu1 %v2051_v63 }
 0x110   :  { %v186_v18 = vpop.f32.mrb[0].mxu0  ;;  %v262_v19 = vpop.f32.mrb[0].mxu1 }
 0x111   :  { %v2217_v20 = vmul.f32 0.17677669, %v186_v18  ;;  %v1788_v21 = vpop.f32.mrb[1].mxu0  ;;  %v2219_v22 = vmul.f32 0.17677669, %v262_v19  ;;  %v1793_v23 = vpop.f32.mrb[1].mxu1 }
 0x112   :  { %v2297_v19 = vld [vmem:[#allocation2 + $0x28] sm:$0xff]  ;;  %v2299_v21 = vld [vmem:[#allocation2 + $0x30] sm:$0xff] }
 0x113   :  { %v772_v24 = vsel %vm771_vm3, %v2217_v20, -inf  ;;  %760 = vst.msk [vmem:[#allocation12 - $0x7] sm:$0x80] %vm759_vm4, %v2217_v20  ;;  %v738_v25 = vrot.slane %v2219_v22, 7  ;;  %v775_v28 = vsel %vm771_vm3, %v2219_v22, -inf }
 0x114   :  { %773 = vmax.xlane.f32.xlu0 %v772_v24  ;;  %v338_v26 = vpop.f32.mrb[2].mxu0  ;;  %v414_v27 = vpop.f32.mrb[2].mxu1 }
 0x115   :  { %v2227_v29 = vmul.f32 0.17677669, %v338_v26  ;;  %v2229_v30 = vmul.f32 0.17677669, %v414_v27  ;;  %v1798_v31 = vpop.f32.mrb[3].mxu0  ;;  %v1803_v32 = vpop.f32.mrb[3].mxu1 }
 0x116   :  { %v2316_v31 = vld [vmem:[#allocation2 + $0x38] sm:$0xff] }
 0x117   :  { %v739_v33 = vrot.slane %v2227_v29, 6  ;;  %v778_v34 = vsel %vm771_vm3, %v2227_v29, -inf  ;;  %v742_v35 = vrot.slane %v2229_v30, 5  ;;  %v781_v38 = vsel %vm771_vm3, %v2229_v30, -inf }
 0x118   :  { %776 = vmax.xlane.f32.xlu0 %v775_v28  ;;  %v490_v36 = vpop.f32.mrb[4].mxu0  ;;  %v566_v37 = vpop.f32.mrb[4].mxu1  ;;  %779 = vmax.xlane.f32.xlu1 %v778_v34 }
 0x119   :  { %v741_v39 = vsel %vm740_vm5, %v739_v33, %v738_v25  ;;  %v2237_v40 = vmul.f32 0.17677669, %v490_v36  ;;  %v2239_v41 = vmul.f32 0.17677669, %v566_v37  ;;  %v1808_v42 = vpop.f32.mrb[5].mxu0  ;;  %v1813_v43 = vpop.f32.mrb[5].mxu1 }
 0x11a   :  { %v744_v46 = vsel %vm743_vm6, %v742_v35, %v741_v39  ;;  %v105_v35 = vld [vmem:[#allocation10] sm:$0xff] }
 0x11b   :  { %v745_v44 = vrot.slane %v2237_v40, 4  ;;  %v784_v45 = vsel %vm771_vm3, %v2237_v40, -inf  ;;  %v748_v47 = vrot.slane %v2239_v41, 3  ;;  %v787_v50 = vsel %vm771_vm3, %v2239_v41, -inf  ;;  %1825 = vmatpush3.msra.mxu0 %v105_v35 }
 0x11c   :  { %v642_v48 = vpop.f32.mrb[6].mxu0  ;;  %v718_v49 = vpop.f32.mrb[6].mxu1  ;;  %782 = vmax.xlane.f32.xlu1 %v781_v38  ;;  %785 = vmax.xlane.f32.xlu0 %v784_v45  ;;  %v106_v38 = vld [vmem:[#allocation10 + $0x8] sm:$0xff] }
 0x11d   :  { %v747_v51 = vsel %vm746_vm7, %v745_v44, %v744_v46  ;;  %v2247_v52 = vmul.f32 0.17677669, %v642_v48  ;;  %v2249_v53 = vmul.f32 0.17677669, %v718_v49  ;;  %v1818_v54 = vpop.f32.mrb[7].mxu0  ;;  %v1823_v55 = vpop.f32.mrb[7].mxu1  ;;  %1834 = vmatprep.subr.mxu0 %v2048_v0  ;;  %1830 = vmatpush3.msra.mxu1 %v106_v38 }
 0x11e   :  { %v750_v59 = vsel %vm749_vm8, %v748_v47, %v747_v51  ;;  %1839 = vmatprep.subr.mxu1 %v2048_v0  ;;  %v107_v54 = vld [vmem:[#allocation10 + $0x10] sm:$0xff] }
 0x11f   :  { %v751_v56 = vrot.slane %v2247_v52, 2  ;;  %v754_v57 = vrot.slane %v2249_v53, 1  ;;  %v790_v58 = vsel %vm771_vm3, %v2247_v52, -inf  ;;  %v793_v60 = vsel %vm771_vm3, %v2249_v53, -inf }
 0x120   :  { %788 = vmax.xlane.f32.xlu1 %v787_v50  ;;  %791 = vmax.xlane.f32.xlu0 %v790_v58 }
 0x121   :  { %v753_v61 = vsel %vm752_vm9, %v751_v56, %v750_v59 }
 0x122   :  { %v756_v62 = vsel %vm755_vm10, %v754_v57, %v753_v61 }
 0x123   :  { %762 = vst.msk [vmem:[#allocation12 + $0x1] sm:$0x7f] %vm761_vm11, %v756_v62 }
 0x124   :  { %794 = vmax.xlane.f32.xlu1 %v793_v60 }
 0x1a1   :  { %v774_v2 = vpop.xlane.xlu0 %773 }
 0x1a2   :  { %v2261_v3 = vmax.f32 %v2258_v1, %v774_v2 }
 0x1a4   :  { %v804_v6 = vsub.f32 %v2258_v1, %v2261_v3  ;;  %1605 = vst.msk [vmem:[#allocation2] sm:$0xff] %vm63_vm2, %v2261_v3  ;;  %830 = vperm.xlu0 %1875, %v2261_v3  }
 0x1a5   :  { %v777_v7 = vpop.xlane.xlu0 %776  ;;  %v780_v8 = vpop.xlane.xlu1 %779 }
 0x1a6   :  { %v2273_v9 = vmax.f32 %v2263_v4, %v777_v7  ;;  %v2276_v10 = vmax.f32 %v2265_v5, %v780_v8 }
 0x1a8   :  { %v805_v13 = vsub.f32 %v2263_v4, %v2273_v9  ;;  %1606 = vst.msk [vmem:[#allocation2 + $0x8] sm:$0xff] %vm63_vm2, %v2273_v9  ;;  %835 = vperm.xlu1 %1876, %v2273_v9   ;;  %v806_v14 = vsub.f32 %v2265_v5, %v2276_v10  ;;  %1607 = vst.msk [vmem:[#allocation2 + $0x10] sm:$0xff] %vm63_vm2, %v2276_v10 }
 0x1a9   :  { %v783_v15 = vpop.xlane.xlu1 %782  ;;  %v786_v16 = vpop.xlane.xlu0 %785 }
 0x1aa   :  { %v2292_v17 = vmax.f32 %v2278_v11, %v783_v15  ;;  %v2295_v18 = vmax.f32 %v2280_v12, %v786_v16 }
 0x1ac   :  { %840 = vperm.xlu1 %1876, %v2276_v10   ;;  %v807_v23 = vsub.f32 %v2278_v11, %v2292_v17  ;;  %1608 = vst.msk [vmem:[#allocation2 + $0x18] sm:$0xff] %vm63_vm2, %v2292_v17  ;;  %v808_v24 = vsub.f32 %v2280_v12, %v2295_v18  ;;  %1609 = vst.msk [vmem:[#allocation2 + $0x20] sm:$0xff] %vm63_vm2, %v2295_v18 }
 0x1ad   :  { %v789_v25 = vpop.xlane.xlu1 %788  ;;  %v792_v26 = vpop.xlane.xlu0 %791 }
 0x1ae   :  { %v2311_v27 = vmax.f32 %v2297_v19, %v789_v25  ;;  %v2314_v28 = vmax.f32 %v2299_v21, %v792_v26  ;;  %v820_v4 = vmul.f32 1.442695, %v808_v24 }
 0x1b0   :  { %845 = vperm.xlu1 %1876, %v2292_v17   ;;  %v809_v32 = vsub.f32 %v2297_v19, %v2311_v27  ;;  %1610 = vst.msk [vmem:[#allocation2 + $0x28] sm:$0xff] %vm63_vm2, %v2311_v27  ;;  %v810_v33 = vsub.f32 %v2299_v21, %v2314_v28  ;;  %1611 = vst.msk [vmem:[#allocation2 + $0x30] sm:$0xff] %vm63_vm2, %v2314_v28 }
 0x1b1   :  { %v795_v34 = vpop.xlane.xlu1 %794 }
 0x1b2   :  { %v2328_v36 = vmax.f32 %v2316_v31, %v795_v34  ;;  %v822_v1 = vmul.f32 1.442695, %v809_v32  ;;  %v824_v3 = vmul.f32 1.442695, %v810_v33 }
 0x1b4   :  { %850 = vperm.xlu1 %1876, %v2295_v18   ;;  %v811_v37 = vsub.f32 %v2316_v31, %v2328_v36  ;;  %1612 = vst.msk [vmem:[#allocation2 + $0x38] sm:$0xff] %vm63_vm2, %v2328_v36  ;;  %v892_v18 = vld [vmem:[#allocation3] sm:$0xff]  ;;  %v894_v31 = vld [vmem:[#allocation3 + $0x10] sm:$0xff] }
 0x1b6   :  { %v826_v5 = vmul.f32 1.442695, %v811_v37  ;;  %v895_v37 = vld [vmem:[#allocation3 + $0x18] sm:$0xff] }
 0x1b8   :  { %855 = vperm.xlu1 %1876, %v2311_v27  }
 0x1bc   :  { %860 = vperm.xlu1 %1876, %v2314_v28  }
 0x1c0   :  { %865 = vperm.xlu1 %1876, %v2328_v36  }
 0x223   :  { %v831_v39 = vpop.permute.xlu0 %830 }
 0x224   :  { %v868_v42 = vsub.f32 %v2217_v20, %v831_v39 }
 0x226   :  { %v876_v43 = vmul.f32 1.442695, %v868_v42 }
 0x227   :  { %v836_v44 = vpop.permute.xlu1 %835 }
 0x228   :  { %1877 = vpow2.f32 %v876_v43  ;;  %v869_v45 = vsub.f32 %v2219_v22, %v836_v44 }
 0x22a   :  { %v878_v46 = vmul.f32 1.442695, %v869_v45 }
 0x22b   :  { %v841_v47 = vpop.permute.xlu1 %840 }
 0x22c   :  { %1879 = vpow2.f32 %v878_v46  ;;  %v870_v48 = vsub.f32 %v2227_v29, %v841_v47  ;;  %v108_v29 = vld [vmem:[#allocation10 + $0x18] sm:$0xff] }
 0x22e   :  { %v880_v49 = vmul.f32 1.442695, %v870_v48  ;;  %v814_v48 = vmul.f32 1.442695, %v805_v13 }
 0x22f   :  { %v846_v50 = vpop.permute.xlu1 %845 }
 0x230   :  { %1881 = vpow2.f32 %v880_v49  ;;  %v871_v51 = vsub.f32 %v2229_v30, %v846_v50  ;;  %v816_v49 = vmul.f32 1.442695, %v806_v14  ;;  %v818_v50 = vmul.f32 1.442695, %v807_v23  ;;  %v893_v23 = vld [vmem:[#allocation3 + $0x8] sm:$0xff] }
 0x232   :  { %v1878_v55 = vpop.eup %1877  ;;  %v882_v56 = vmul.f32 1.442695, %v871_v51 }
 0x233   :  { %v851_v57 = vpop.permute.xlu1 %850  ;;  %1827 = vmatmul.mubr.msk.f32.vlgmr.msra.gmra.mrb[8].mxu0 %vm771_vm3, %v1878_v55  ;;  %v908_v20 = vsel %vm771_vm3, %v1878_v55, 0.0 }
 0x234   :  { %1883 = vpow2.f32 %v882_v56  ;;  %v872_v22 = vsub.f32 %v2237_v40, %v851_v57  ;;  %909 = vadd.xlane.f32.xlu1 %v908_v20  ;;  %1835 = vmatpush3.msra.mxu0 %v107_v54  ;;  %v109_v40 = vld [vmem:[#allocation10 + $0x20] sm:$0xff] }
 0x235   :  { %1836 = vmatprep.mubr.msk.f32.mxu0 %vm2049_vm1, %v2048_v0  ;;  %1844 = vmatprep.subr.mxu0 %v2048_v0  ;;  %v896_v57 = vld [vmem:[#allocation3 + $0x20] sm:$0xff] }
 0x236   :  { %v1880_v30 = vpop.eup %1879  ;;  %v884_v58 = vmul.f32 1.442695, %v872_v22 }
 0x237   :  { %1832 = vmatmul.mubr.msk.f32.vlgmr.msra.gmra.mrb[8].mxu1 %vm771_vm3, %v1880_v30  ;;  %v856_v59 = vpop.permute.xlu1 %855  ;;  %v911_v60 = vsel %vm771_vm3, %v1880_v30, 0.0 }
 0x238   :  { %1885 = vpow2.f32 %v884_v58  ;;  %v873_v61 = vsub.f32 %v2239_v41, %v856_v59  ;;  %912 = vadd.xlane.f32.xlu0 %v911_v60  ;;  %1840 = vmatpush3.msra.mxu1 %v108_v29  ;;  %v110_v41 = vld [vmem:[#allocation10 + $0x28] sm:$0xff] }
 0x239   :  { %1841 = vmatprep.mubr.msk.f32.mxu1 %vm2049_vm1, %v2048_v0  ;;  %1849 = vmatprep.subr.mxu1 %v2048_v0  ;;  %v897_v58 = vld [vmem:[#allocation3 + $0x28] sm:$0xff] }
 0x23a   :  { %v1882_v62 = vpop.eup %1881  ;;  %v886_v63 = vmul.f32 1.442695, %v873_v61 }
 0x23b   :  { %v861_v2 = vpop.permute.xlu1 %860  ;;  %1837 = vmatmul.mubr.msk.f32.vlgmr.msra.gmra.mrb[10].mxu0 %vm771_vm3, %v1882_v62  ;;  %v914_v7 = vsel %vm771_vm3, %v1882_v62, 0.0  ;;  %v898_v62 = vld [vmem:[#allocation3 + $0x30] sm:$0xff] }
 0x23c   :  { %1887 = vpow2.f32 %v886_v63  ;;  %v874_v8 = vsub.f32 %v2247_v52, %v861_v2  ;;  %915 = vadd.xlane.f32.xlu0 %v914_v7  ;;  %1845 = vmatpush3.msra.mxu0 %v109_v40  ;;  %v111_v52 = vld [vmem:[#allocation10 + $0x30] sm:$0xff] }
 0x23d   :  { %1846 = vmatprep.mubr.msk.f32.mxu0 %vm2049_vm1, %v2048_v0  ;;  %1854 = vmatprep.subr.mxu0 %v2048_v0 }
 0x23e   :  { %v1884_v15 = vpop.eup %1883  ;;  %v888_v16 = vmul.f32 1.442695, %v874_v8 }
 0x23f   :  { %1842 = vmatmul.mubr.msk.f32.vlgmr.msra.gmra.mrb[10].mxu1 %vm771_vm3, %v1884_v15  ;;  %v866_v25 = vpop.permute.xlu1 %865  ;;  %v917_v26 = vsel %vm771_vm3, %v1884_v15, 0.0 }
 0x240   :  { %1889 = vpow2.f32 %v888_v16  ;;  %v875_v34 = vsub.f32 %v2249_v53, %v866_v25  ;;  %918 = vadd.xlane.f32.xlu1 %v917_v26  ;;  %1850 = vmatpush3.msra.mxu1 %v110_v41  ;;  %v112_v53 = vld [vmem:[#allocation10 + $0x38] sm:$0xff] }
 0x241   :  { %1851 = vmatprep.mubr.msk.f32.mxu1 %vm2049_vm1, %v2048_v0  ;;  %1859 = vmatprep.subr.mxu1 %v2048_v0  ;;  %v899_v41 = vld [vmem:[#allocation3 + $0x38] sm:$0xff] }
 0x242   :  { %v1886_v35 = vpop.eup %1885  ;;  %v890_v38 = vmul.f32 1.442695, %v875_v34 }
 0x243   :  { %1847 = vmatmul.mubr.msk.f32.vlgmr.msra.gmra.mrb[12].mxu0 %vm771_vm3, %v1886_v35  ;;  %v920_v39 = vsel %vm771_vm3, %v1886_v35, 0.0 }
 0x244   :  { %1891 = vpow2.f32 %v890_v38  ;;  %921 = vadd.xlane.f32.xlu0 %v920_v39  ;;  %1855 = vmatpush3.msra.mxu0 %v111_v52 }
 0x245   :  { %1856 = vmatprep.mubr.msk.f32.mxu0 %vm2049_vm1, %v2048_v0  ;;  %1893 = vpow2.f32 %v814_v48 }
 0x246   :  { %v1888_v42 = vpop.eup %1887 }
 0x247   :  { %1852 = vmatmul.mubr.msk.f32.vlgmr.msra.gmra.mrb[12].mxu1 %vm771_vm3, %v1888_v42  ;;  %v923_v43 = vsel %vm771_vm3, %v1888_v42, 0.0 }
 0x248   :  { %924 = vadd.xlane.f32.xlu1 %v923_v43  ;;  %1860 = vmatpush3.msra.mxu1 %v112_v53 }
 0x249   :  { %1861 = vmatprep.mubr.msk.f32.mxu1 %vm2049_vm1, %v2048_v0  ;;  %v812_v0 = vmul.f32 1.442695, %v804_v6 }
 0x24a   :  { %v1890_v44 = vpop.eup %1889 }
 0x24b   :  { %1857 = vmatmul.mubr.msk.f32.vlgmr.msra.gmra.mrb[14].mxu0 %vm771_vm3, %v1890_v44  ;;  %v926_v45 = vsel %vm771_vm3, %v1890_v44, 0.0  ;;  %1895 = vpow2.f32 %v812_v0 }
 0x24c   :  { %927 = vadd.xlane.f32.xlu0 %v926_v45  ;;  %1897 = vpow2.f32 %v816_v49 }
 0x24d   :  { %1899 = vpow2.f32 %v818_v50 }
 0x24e   :  { %v1892_v46 = vpop.eup %1891  ;;  %1901 = vpow2.f32 %v820_v4 }
 0x24f   :  { %1862 = vmatmul.mubr.msk.f32.vlgmr.msra.gmra.mrb[14].mxu1 %vm771_vm3, %v1892_v46  ;;  %v929_v47 = vsel %vm771_vm3, %v1892_v46, 0.0  ;;  %1903 = vpow2.f32 %v822_v1  ;;  %v1894_v6 = vpop.eup %1893 }
 0x250   :  { %930 = vadd.xlane.f32.xlu1 %v929_v47  ;;  %1905 = vpow2.f32 %v824_v3  ;;  %v901_v27 = vmul.f32 %v1894_v6, %v893_v23 }
 0x251   :  { %1907 = vpow2.f32 %v826_v5 }
 0x255   :  { %v1896_v9 = vpop.eup %1895 }
 0x256   :  { %v1898_v10 = vpop.eup %1897  ;;  %v900_v19 = vmul.f32 %v1896_v9, %v892_v18 }
 0x257   :  { %v1900_v11 = vpop.eup %1899  ;;  %v902_v33 = vmul.f32 %v1898_v10, %v894_v31 }
 0x258   :  { %v1902_v12 = vpop.eup %1901  ;;  %v903_v55 = vmul.f32 %v1900_v11, %v895_v37 }
 0x259   :  { %v1904_v13 = vpop.eup %1903  ;;  %v904_v29 = vmul.f32 %v1902_v12, %v896_v57 }
 0x25a   :  { %v1906_v14 = vpop.eup %1905  ;;  %v905_v61 = vmul.f32 %v1904_v13, %v897_v58 }
 0x25b   :  { %v1908_v17 = vpop.eup %1907  ;;  %v906_v7 = vmul.f32 %v1906_v14, %v898_v62 }
 0x25c   :  { %v907_v25 = vmul.f32 %v1908_v17, %v899_v41 }
 0x261   :  { %964 = vperm.xlu1 %1876, %v1894_v6  }
 0x262   :  { %959 = vperm.xlu0 %1875, %v1896_v9  }
 0x265   :  { %969 = vperm.xlu1 %1876, %v1898_v10  }
 0x266   :  { %974 = vperm.xlu0 %1875, %v1900_v11  }
 0x269   :  { %979 = vperm.xlu1 %1876, %v1902_v12  }
 0x26a   :  { %984 = vperm.xlu0 %1875, %v1904_v13  }
 0x26d   :  { %989 = vperm.xlu1 %1876, %v1906_v14  }
 0x26e   :  { %994 = vperm.xlu0 %1875, %v1908_v17  }
 0x2c1   :  { %v910_v21 = vpop.xlane.xlu1 %909 }
 0x2c2   :  { %v932_v24 = vadd.f32 %v910_v21, %v900_v19 }
 0x2c4   :  { %941 = vst.msk [vmem:[#allocation3] sm:$0xff] %vm63_vm2, %v932_v24 }
 0x2c5   :  { %v913_v28 = vpop.xlane.xlu0 %912 }
 0x2c6   :  { %v933_v32 = vadd.f32 %v913_v28, %v901_v27 }
 0x2c8   :  { %942 = vst.msk [vmem:[#allocation3 + $0x8] sm:$0xff] %vm63_vm2, %v933_v32 }
 0x2c9   :  { %v916_v36 = vpop.xlane.xlu0 %915 }
 0x2ca   :  { %v934_v51 = vadd.f32 %v916_v36, %v902_v33 }
 0x2cb   :  { %v1624_v54 = vld [vmem:[#allocation3] sm:$0xff] }
 0x2cc   :  { %943 = vst.msk [vmem:[#allocation3 + $0x10] sm:$0xff] %vm63_vm2, %v934_v51  ;;  %1634 = vperm.xlu1 %1876, %v1624_v54  }
 0x2cd   :  { %v919_v56 = vpop.xlane.xlu1 %918 }
 0x2ce   :  { %v935_v20 = vadd.f32 %v919_v56, %v903_v55 }
 0x2cf   :  { %v1625_v22 = vld [vmem:[#allocation3 + $0x8] sm:$0xff] }
 0x2d0   :  { %944 = vst.msk [vmem:[#allocation3 + $0x18] sm:$0xff] %vm63_vm2, %v935_v20  ;;  %1639 = vperm.xlu0 %1875, %v1625_v22  }
 0x2d1   :  { %v922_v30 = vpop.xlane.xlu0 %921 }
 0x2d2   :  { %v936_v59 = vadd.f32 %v922_v30, %v904_v29 }
 0x2d3   :  { %v1626_v60 = vld [vmem:[#allocation3 + $0x10] sm:$0xff] }
 0x2d4   :  { %945 = vst.msk [vmem:[#allocation3 + $0x20] sm:$0xff] %vm63_vm2, %v936_v59  ;;  %1644 = vperm.xlu1 %1876, %v1626_v60  }
 0x2d5   :  { %v925_v40 = vpop.xlane.xlu1 %924 }
 0x2d6   :  { %v937_v63 = vadd.f32 %v925_v40, %v905_v61 }
 0x2d7   :  { %v1627_v2 = vld [vmem:[#allocation3 + $0x18] sm:$0xff] }
 0x2d8   :  { %946 = vst.msk [vmem:[#allocation3 + $0x28] sm:$0xff] %vm63_vm2, %v937_v63  ;;  %1649 = vperm.xlu0 %1875, %v1627_v2  }
 0x2d9   :  { %v928_v8 = vpop.xlane.xlu0 %927 }
 0x2da   :  { %v938_v15 = vadd.f32 %v928_v8, %v906_v7 }
 0x2db   :  { %v1628_v16 = vld [vmem:[#allocation3 + $0x20] sm:$0xff] }
 0x2dc   :  { %947 = vst.msk [vmem:[#allocation3 + $0x30] sm:$0xff] %vm63_vm2, %v938_v15  ;;  %1654 = vperm.xlu1 %1876, %v1628_v16  }
 0x2dd   :  { %v931_v26 = vpop.xlane.xlu1 %930 }
 0x2de   :  { %v939_v34 = vadd.f32 %v931_v26, %v907_v25 }
 0x2df   :  { %v1629_v52 = vld [vmem:[#allocation3 + $0x28] sm:$0xff] }
 0x2e0   :  { %948 = vst.msk [vmem:[#allocation3 + $0x38] sm:$0xff] %vm63_vm2, %v939_v34  ;;  %1659 = vperm.xlu0 %1875, %v1629_v52  }
 0x2e3   :  { %v1630_v35 = vld [vmem:[#allocation3 + $0x30] sm:$0xff] }
 0x2e4   :  { %1664 = vperm.xlu1 %1876, %v1630_v35  }
 0x2e7   :  { %v1631_v38 = vld [vmem:[#allocation3 + $0x38] sm:$0xff] }
 0x2e8   :  { %1669 = vperm.xlu0 %1875, %v1631_v38  }
 0x2e9   :  { %2002 = shalt.err (!%p1999_p0)
}
 0x2ea   :  { %s2003_s5 = scalar_lea.hbm %s2459_s4, 128 }
 0x2eb   :  { %p2004_p1 = scmp.ne.s32.totalorder %s2459_s4, %s2003_s5  ;;  %p2007_p2 = scmp.lt.u32.totalorder %s2003_s5, %s2459_s4 }
 0x2ed   :  { %p2009_p3 = pnand %p2007_p2, %p2004_p1 }
 0x2ef   :  { %2012 = shalt.err (!%p2009_p3)
}
 0x2f0   :  { %1717 = dma.vmem_to_hbm [thread:$0]  %s1715_s25, 128, %s2459_s4, [#allocation13]   ;;  %v949_v39 = vld [vmem:[#allocation4] sm:$0xff]  ;;  %v960_v53 = vpop.permute.xlu0 %959  ;;  %v965_v42 = vpop.permute.xlu1 %964  ;;  %v950_v44 = vld [vmem:[#allocation4 + $0x8] sm:$0xff]  ;;  %v951_v0 = vld [vmem:[#allocation4 + $0x10] sm:$0xff] }
 0x2f1   :  { %v997_v43 = vmul.f32 %v960_v53, %v949_v39  ;;  %v998_v48 = vmul.f32 %v965_v42, %v950_v44  ;;  %v952_v5 = vld [vmem:[#allocation4 + $0x18] sm:$0xff]  ;;  %v953_v13 = vld [vmem:[#allocation4 + $0x20] sm:$0xff]  ;;  %v954_v23 = vld [vmem:[#allocation4 + $0x28] sm:$0xff]  ;;  %s2053_s4 = smov [#allocation11]  }
 0x2f2   :  { %v955_v33 = vld [vmem:[#allocation4 + $0x30] sm:$0xff]  ;;  %v956_v56 = vld [vmem:[#allocation4 + $0x38] sm:$0xff]  ;;  %s1701_s12 = sshll.u32 %s2053_s4, 4  ;;  %s1702_s12 = int_to_ptr.vmem [resolvable:$true] %s1701_s12 }
 0x2f3   :  { %s2013_s1 = scalar_lea.vmem %s1702_s12, 1024  ;;  %p2018_p5 = scmp.lt.s32.totalorder %s1702_s12, %s1702_s12 }
 0x2f4   :  { %v970_v49 = vpop.permute.xlu1 %969  ;;  %v975_v6 = vpop.permute.xlu0 %974  ;;  %p2014_p4 = scmp.ne.s32.totalorder %s1702_s12, %s2013_s1  ;;  %p2019_p6 = scmp.lt.s32.totalorder %s2013_s1, %s2013_s1 }
 0x2f5   :  { %v999_v3 = vmul.f32 %v970_v49, %v951_v0  ;;  %v1000_v12 = vmul.f32 %v975_v6, %v952_v5 }
 0x2f6   :  { %p2020_p7 = por %p2019_p6, %p2018_p5 }
 0x2f8   :  { %v980_v14 = vpop.permute.xlu1 %979  ;;  %v985_v24 = vpop.permute.xlu0 %984  ;;  %p2021_p8 = pnand %p2020_p7, %p2014_p4 }
 0x2f9   :  { %v1001_v21 = vmul.f32 %v980_v14, %v953_v13  ;;  %v1002_v32 = vmul.f32 %v985_v24, %v954_v23 }
 0x2fc   :  { %v990_v36 = vpop.permute.xlu1 %989  ;;  %v995_v57 = vpop.permute.xlu0 %994 }
 0x2fd   :  { %v1003_v55 = vmul.f32 %v990_v36, %v955_v33  ;;  %v1004_v30 = vmul.f32 %v995_v57, %v956_v56 }
 0x306   :  { %v1074_v45 = vpop.f32.mrb[8].mxu0 }
 0x307   :  { %v1589_v46 = vadd.f32 %v1074_v45, %v997_v43  ;;  %v1828_v47 = vpop.f32.mrb[9].mxu0 }
 0x309   :  { %1597 = vst.msk [vmem:[#allocation4] sm:$0xff] %vm80_vm0, %v1589_v46 }
 0x30a   :  { %v1147_v50 = vpop.f32.mrb[8].mxu1 }
 0x30b   :  { %v1590_v4 = vadd.f32 %v1147_v50, %v998_v48  ;;  %v1833_v1 = vpop.f32.mrb[9].mxu1 }
 0x30d   :  { %1598 = vst.msk [vmem:[#allocation4 + $0x8] sm:$0xff] %vm80_vm0, %v1590_v4 }
 0x30e   :  { %v1220_v9 = vpop.f32.mrb[10].mxu0 }
 0x30f   :  { %v1591_v10 = vadd.f32 %v1220_v9, %v999_v3  ;;  %v1838_v11 = vpop.f32.mrb[11].mxu0 }
 0x310   :  { %v1616_v2 = vld [vmem:[#allocation4] sm:$0xff] }
 0x311   :  { %1599 = vst.msk [vmem:[#allocation4 + $0x10] sm:$0xff] %vm80_vm0, %v1591_v10 }
 0x312   :  { %v1293_v17 = vpop.f32.mrb[10].mxu1 }
 0x313   :  { %v1592_v18 = vadd.f32 %v1293_v17, %v1000_v12  ;;  %v1843_v19 = vpop.f32.mrb[11].mxu1 }
 0x314   :  { %v1617_v15 = vld [vmem:[#allocation4 + $0x8] sm:$0xff] }
 0x315   :  { %1600 = vst.msk [vmem:[#allocation4 + $0x18] sm:$0xff] %vm80_vm0, %v1592_v18 }
 0x316   :  { %v1366_v27 = vpop.f32.mrb[12].mxu0 }
 0x317   :  { %v1593_v28 = vadd.f32 %v1366_v27, %v1001_v21  ;;  %v1848_v31 = vpop.f32.mrb[13].mxu0 }
 0x318   :  { %v1618_v34 = vld [vmem:[#allocation4 + $0x10] sm:$0xff] }
 0x319   :  { %1601 = vst.msk [vmem:[#allocation4 + $0x20] sm:$0xff] %vm80_vm0, %v1593_v28 }
 0x31a   :  { %v1439_v37 = vpop.f32.mrb[12].mxu1 }
 0x31b   :  { %v1594_v51 = vadd.f32 %v1439_v37, %v1002_v32  ;;  %v1853_v54 = vpop.f32.mrb[13].mxu1 }
 0x31c   :  { %v1619_v39 = vld [vmem:[#allocation4 + $0x18] sm:$0xff] }
 0x31d   :  { %1602 = vst.msk [vmem:[#allocation4 + $0x28] sm:$0xff] %vm80_vm0, %v1594_v51 }
 0x31e   :  { %v1512_v20 = vpop.f32.mrb[14].mxu0 }
 0x31f   :  { %v1595_v22 = vadd.f32 %v1512_v20, %v1003_v55  ;;  %v1858_v29 = vpop.f32.mrb[15].mxu0 }
 0x320   :  { %v1620_v44 = vld [vmem:[#allocation4 + $0x20] sm:$0xff] }
 0x321   :  { %1603 = vst.msk [vmem:[#allocation4 + $0x30] sm:$0xff] %vm80_vm0, %v1595_v22 }
 0x322   :  { %v1585_v58 = vpop.f32.mrb[14].mxu1 }
 0x323   :  { %v1596_v59 = vadd.f32 %v1585_v58, %v1004_v30  ;;  %v1863_v60 = vpop.f32.mrb[15].mxu1 }
 0x324   :  { %v1621_v48 = vld [vmem:[#allocation4 + $0x28] sm:$0xff] }
 0x325   :  { %1604 = vst.msk [vmem:[#allocation4 + $0x38] sm:$0xff] %vm80_vm0, %v1596_v59 }
 0x328   :  { %v1622_v50 = vld [vmem:[#allocation4 + $0x30] sm:$0xff] }
 0x32c   :  { %v1623_v3 = vld [vmem:[#allocation4 + $0x38] sm:$0xff] }
 0x34b   :  { %v1635_v61 = vpop.permute.xlu1 %1634 }
 0x34c   :  { %1909 = vrcp.f32 %v1635_v61 }
 0x34f   :  { %v1640_v40 = vpop.permute.xlu0 %1639 }
 0x350   :  { %1911 = vrcp.f32 %v1640_v40 }
 0x353   :  { %v1645_v62 = vpop.permute.xlu1 %1644 }
 0x354   :  { %1913 = vrcp.f32 %v1645_v62 }
 0x356   :  { %v1910_v63 = vpop.eup %1909 }
 0x357   :  { %v1673_v7 = vmul.f32 %v1910_v63, %v1616_v2  ;;  %v1650_v8 = vpop.permute.xlu0 %1649 }
 0x358   :  { %1915 = vrcp.f32 %v1650_v8 }
 0x359   :  { %1688 = vst.msk [vmem:[#allocation11] sm:$0xff] %vm80_vm0, %v1673_v7 }
 0x35a   :  { %v1912_v41 = vpop.eup %1911 }
 0x35b   :  { %v1675_v16 = vmul.f32 %v1912_v41, %v1617_v15  ;;  %v1655_v25 = vpop.permute.xlu1 %1654 }
 0x35c   :  { %1917 = vrcp.f32 %v1655_v25 }
 0x35d   :  { %1689 = vst.msk [vmem:[#allocation11 + $0x8] sm:$0xff] %vm80_vm0, %v1675_v16 }
 0x35e   :  { %v1914_v26 = vpop.eup %1913 }
 0x35f   :  { %v1677_v52 = vmul.f32 %v1914_v26, %v1618_v34  ;;  %v1660_v35 = vpop.permute.xlu0 %1659 }
 0x360   :  { %1919 = vrcp.f32 %v1660_v35 }
 0x361   :  { %1690 = vst.msk [vmem:[#allocation11 + $0x10] sm:$0xff] %vm80_vm0, %v1677_v52 }
 0x362   :  { %v1916_v38 = vpop.eup %1915 }
 0x363   :  { %v1679_v53 = vmul.f32 %v1916_v38, %v1619_v39  ;;  %v1665_v42 = vpop.permute.xlu1 %1664 }
 0x364   :  { %1921 = vrcp.f32 %v1665_v42 }
 0x365   :  { %1691 = vst.msk [vmem:[#allocation11 + $0x18] sm:$0xff] %vm80_vm0, %v1679_v53 }
 0x366   :  { %v1918_v43 = vpop.eup %1917 }
 0x367   :  { %v1681_v45 = vmul.f32 %v1918_v43, %v1620_v44  ;;  %v1670_v46 = vpop.permute.xlu0 %1669 }
 0x368   :  { %1923 = vrcp.f32 %v1670_v46 }
 0x369   :  { %1692 = vst.msk [vmem:[#allocation11 + $0x20] sm:$0xff] %vm80_vm0, %v1681_v45 }
 0x36a   :  { %v1920_v47 = vpop.eup %1919 }
 0x36b   :  { %v1683_v0 = vmul.f32 %v1920_v47, %v1621_v48 }
 0x36d   :  { %1693 = vst.msk [vmem:[#allocation11 + $0x28] sm:$0xff] %vm80_vm0, %v1683_v0 }
 0x36e   :  { %v1922_v49 = vpop.eup %1921 }
 0x36f   :  { %v1685_v4 = vmul.f32 %v1922_v49, %v1622_v50 }
 0x371   :  { %1694 = vst.msk [vmem:[#allocation11 + $0x30] sm:$0xff] %vm80_vm0, %v1685_v4 }
 0x372   :  { %v1924_v1 = vpop.eup %1923 }
 0x373   :  { %v1687_v5 = vmul.f32 %v1924_v1, %v1623_v3 }
 0x375   :  { %1695 = vst.msk [vmem:[#allocation11 + $0x38] sm:$0xff] %vm80_vm0, %v1687_v5 }
 0x376   :  { %2024 = shalt.err (!%p2021_p8)
}
 0x377   :  { %s2025_s15 = scalar_lea.hbm %s2458_s3, 1024 }
 0x378   :  { %p2026_p9 = scmp.ne.s32.totalorder %s2458_s3, %s2025_s15  ;;  %p2029_p10 = scmp.lt.u32.totalorder %s2025_s15, %s2458_s3 }
 0x37a   :  { %p2031_p11 = pnand %p2029_p10, %p2026_p9 }
 0x37c   :  { %2034 = shalt.err (!%p2031_p11)
}
 0x37d   :  { %1707 = dma.vmem_to_hbm [thread:$0]  %s1702_s12, 1024, %s2458_s3, [#allocation7], %s2045_s27, %s2045_s27, %s2046_s28  }
 0x37e   :  { %2039 = dma.done.wait [#allocation7], 1024  }
 0x37f   :  { %2040 = vsyncadd [#allocation7], 4294966272 }
 0x380   :  { %2041 = dma.done.wait [#allocation13], 128  }
 0x381   :  { %2042 = vsyncadd [#allocation13], 4294967168 }
 0x382   :  { %1724 = vsyncpa [#allocation6], 1 }
 0x383   :  { %1725 = vsyncpa [#allocation9], 1 }
 0x384   :  { %1726 = vsyncpa [#allocation7], 1 }
 0x385   :  { %1727 = vsyncpa [#allocation13], 1 }

</bundles_post_ra>
